<compile_context>
chip_gen: v7x
topology: tpu7x:2x2x1
jax: 0.10.0
libtpu: 0.0.40
codegen_flags: <defaults>
</compile_context>

<pallas_src>
import math

import jax
import jax.numpy as jnp
from jax.experimental import pallas as pl
from jax.experimental.pallas import tpu as pltpu


# ---------------------------------------------------------------------------
# Parameter setup (plain JAX): sinusoidal PE table, matches the PyTorch buffer.
# ---------------------------------------------------------------------------
def build_positional_encoding(feature_len: int, feature_size: int,
                              dtype=jnp.float32) -> jnp.ndarray:
    """Returns pe of shape (1, feature_len, feature_size)."""
    position = jnp.arange(0, feature_len, dtype=jnp.float32)[:, None]
    div_term = jnp.exp(
        jnp.arange(0, feature_size, 2, dtype=jnp.float32)
        * (-math.log(10000.0) / feature_size))
    angles = position * div_term                          # (L, ceil(F/2))
    pe = jnp.zeros((feature_len, feature_size), dtype=jnp.float32)
    pe = pe.at[:, 0::2].set(jnp.sin(angles))
    # Guard against odd feature_size (the PyTorch original would crash there).
    pe = pe.at[:, 1::2].set(jnp.cos(angles[:, : feature_size // 2]))
    return pe[None, :, :].astype(dtype)                   # (1, L, F)


# ---------------------------------------------------------------------------
# Kernels
# ---------------------------------------------------------------------------
def _pe_add_rows_kernel(x_ref, pe_ref, o_ref):
    # x_ref/o_ref: (row_tile, lane_tile); pe_ref: (1, lane_tile) broadcast over rows.
    o_ref[...] = x_ref[...] + pe_ref[...]


def _pe_add_batch_kernel(x_ref, pe_ref, o_ref):
    # x_ref/o_ref: (1, g_tile, C); pe_ref: (g_tile, C) broadcast over the batch dim.
    o_ref[...] = x_ref[...] + pe_ref[...][None, :, :]


# ---------------------------------------------------------------------------
# Tiling helpers
# ---------------------------------------------------------------------------
_LANE = 128
_TARGET_BLOCK_BYTES = 2 * 1024 * 1024   # ~2 MiB/buffer: at the HBM-roofline knee,
                                        # with headroom inside v7x's 64 MiB VMEM.


def _sublane_pack(itemsize: int) -> int:
    return {4: 8, 2: 16, 1: 32}.get(itemsize, 8)


def _round_down(x: int, m: int) -> int:
    return (x // m) * m


def _vmem_limit_bytes() -> int:
    try:
        cap = int(pltpu.get_tpu_info().vmem_capacity_bytes)
    except Exception:                       # query unavailable on some versions
        cap = 64 * 1024 * 1024              # conservative: v7x has 64 MiB per TC
    return min(cap * 3 // 4, 64 * 1024 * 1024)


# ---------------------------------------------------------------------------
# Forward
# ---------------------------------------------------------------------------
def positional_encoding_forward(x: jnp.ndarray, pe: jnp.ndarray, *,
                                min_pallas_bytes: int = 512 * 1024) -> jnp.ndarray:
    """x: (B, L, F), pe: (1, L, F) -> x + pe, shape (B, L, F)."""
    B, L, F = x.shape
    assert pe.shape == (1, L, F), "pe must be (1, feature_len, feature_size)"
    N = L * F
    itemsize = jnp.dtype(x.dtype).itemsize
    pack = _sublane_pack(itemsize)

    # Tiny activations: a standalone pallas_call only adds launch + per-step
    # overhead; let XLA fuse the broadcast add into adjacent work instead.
    if B * N * itemsize < min_pallas_bytes:
        return x + pe

    vmem_limit = _vmem_limit_bytes()
    target_elems = max(_LANE * pack, _TARGET_BLOCK_BYTES // itemsize)

    # Prefer the (B, G, C) presentation when the batch is too small to fill
    # sublanes but the per-sample row is lane-dense and large enough to pack.
    use_batch_grid = (B < pack) and (N % _LANE == 0) and (N >= pack * _LANE)

    if use_batch_grid:
        # ---- Path 1: (B, G, C) layout -> full sublane density for small B ----
        # Factor N = G * C with C a lane-dense width and G >= pack, preferring
        # wide C (fewer, larger DMAs). Fixed candidate list, no divisor scan.
        C = _LANE
        for cand in (2048, 1024, 512, 256, 128):
            if N % cand == 0 and N // cand >= pack:
                C = cand
                break
        G = N // C

        g_tile = max(pack, _round_down(target_elems // C, pack))
        if g_tile >= G:
            g_tile = G                      # full axis: always a legal block dim
        # Keep >=2 grid steps for real work (v7x has 2 TensorCores per chip).
        if B == 1 and g_tile == G and G >= 2 * pack and N * itemsize > (1 << 20):
            g_tile = max(pack, _round_down((G + 1) // 2, pack))

        grid = (pl.cdiv(G, g_tile), B)      # g-tiles outer (slow), batch inner (fast)
        x3 = x.reshape(B, G, C)
        pe2 = pe.reshape(G, C)

        out = pl.pallas_call(
            _pe_add_batch_kernel,
            out_shape=jax.ShapeDtypeStruct((B, G, C), x.dtype),
            grid=grid,
            in_specs=[
                pl.BlockSpec((1, g_tile, C), lambda g, b: (b, g, 0)),   # x tile
                # pe's block index is constant across the fast batch axis, so
                # Pallas skips its re-DMA after the first step of each g sweep.
                pl.BlockSpec((g_tile, C), lambda g, b: (g, 0)),
            ],
            out_specs=pl.BlockSpec((1, g_tile, C), lambda g, b: (b, g, 0)),
            compiler_params=pltpu.CompilerParams(
                dimension_semantics=("parallel", "parallel"),
                vmem_limit_bytes=vmem_limit,
            ),
        )(x3, pe2)
        return out.reshape(B, L, F)

    # ---- Path 2: flat lane-dense (B, N) layout -------------------------------
    # Row tile: a sublane-pack multiple when B allows (dense vst); otherwise the
    # full (small) batch axis, which is always a legal block dimension.
    if B >= pack:
        row_tile = min(_round_down(B, pack), 8 * pack)
    else:
        row_tile = B

    # Lane tile: biggest lane-dense width within the per-buffer target. cdiv
    # tiling (edge blocks masked) — no requirement that it divides N exactly.
    lane_target = max(_LANE, _round_down(target_elems // row_tile, _LANE))
    lane_tile = N if lane_target >= N else lane_target

    # Keep >=2 grid steps for real work (v7x has 2 TensorCores per chip).
    n_steps = pl.cdiv(N, lane_tile) * pl.cdiv(B, row_tile)
    if n_steps == 1 and B * N * itemsize > (1 << 20) and N >= 2 * _LANE:
        lane_tile = max(_LANE, (((N + 1) // 2 + _LANE - 1) // _LANE) * _LANE)

    grid = (pl.cdiv(N, lane_tile), pl.cdiv(B, row_tile))  # lanes outer, rows inner
    x2 = x.reshape(B, N)
    pe2 = pe.reshape(1, N)

    out = pl.pallas_call(
        _pe_add_rows_kernel,
        out_shape=jax.ShapeDtypeStruct((B, N), x.dtype),
        grid=grid,
        in_specs=[
            pl.BlockSpec((row_tile, lane_tile), lambda j, i: (i, j)),   # x tile
            # pe's block index is constant across the fast row axis, so Pallas
            # skips its re-DMA after the first step of each lane-tile sweep.
            pl.BlockSpec((1, lane_tile), lambda j, i: (0, j)),
        ],
        out_specs=pl.BlockSpec((row_tile, lane_tile), lambda j, i: (i, j)),
        compiler_params=pltpu.CompilerParams(
            dimension_semantics=("parallel", "parallel"),
            vmem_limit_bytes=vmem_limit,
        ),
    )(x2, pe2)
    return out.reshape(B, L, F)


# ---------------------------------------------------------------------------
# Test
# ---------------------------------------------------------------------------
if __name__ == "__main__":
    key = jax.random.PRNGKey(0)

    # Case 1: module's natural small shape (batch=2, feature_len=8, feature_size=64).
    # min_pallas_bytes=0 forces the Pallas path (the default would route this
    # tiny activation to the XLA-fused fast path).
    B, L, F = 2, 8, 64
    x = jax.random.normal(key, (B, L, F), dtype=jnp.float32)
    pe = build_positional_encoding(L, F, dtype=x.dtype)
    out = jax.block_until_ready(
        positional_encoding_forward(x, pe, min_pallas_bytes=0))
    assert out.shape == (B, L, F)
    assert jnp.allclose(out, x + pe, atol=1e-6), "mismatch vs reference (flat path)"

    # Case 2: small-batch shape that exercises the sublane-dense (B, G, C) path.
    B2, L2, F2 = 2, 32, 64
    x2 = jax.random.normal(jax.random.PRNGKey(1), (B2, L2, F2), dtype=jnp.float32)
    pe2 = build_positional_encoding(L2, F2, dtype=x2.dtype)
    out2 = jax.block_until_ready(
        positional_encoding_forward(x2, pe2, min_pallas_bytes=0))
    assert out2.shape == (B2, L2, F2)
    assert jnp.allclose(out2, x2 + pe2, atol=1e-6), "mismatch vs reference (batch path)"

    # Case 3: fast path (plain JAX) with default threshold.
    out3 = jax.block_until_ready(positional_encoding_forward(x, pe))
    assert jnp.allclose(out3, x + pe, atol=1e-6), "mismatch vs reference (fast path)"

    print("KERNEL_OK")
</pallas_src>

<mosaic_0001>
module attributes {stable_mosaic.version = 11 : i64} {
  func.func @_pe_add_rows_kernel(%arg0: i32, %arg1: i32, %arg2: memref<2x512xf32, #tpu.memory_space<vmem>>, %arg3: memref<1x512xf32, #tpu.memory_space<vmem>>, %arg4: memref<2x512xf32, #tpu.memory_space<vmem>>) attributes {dimension_semantics = [#tpu.dimension_semantics<parallel>, #tpu.dimension_semantics<parallel>], iteration_bounds = array<i64: 1, 1>, scalar_prefetch = 0 : i64, scratch_operands = 0 : i64, tpu.core_type = #tpu.core_type<tc>, window_params = [{transform_indices = @transform_0, window_bounds = array<i64: 2, 512>}, {transform_indices = @transform_1, window_bounds = array<i64: 1, 512>}, {transform_indices = @transform_2, window_bounds = array<i64: 2, 512>}]} {
    %c0 = arith.constant 0 : index
    %c0_0 = arith.constant 0 : index
    %0 = vector.load %arg2[%c0, %c0_0] : memref<2x512xf32, #tpu.memory_space<vmem>>, vector<2x512xf32>
    %c0_1 = arith.constant 0 : index
    %c0_2 = arith.constant 0 : index
    %1 = vector.load %arg3[%c0_1, %c0_2] : memref<1x512xf32, #tpu.memory_space<vmem>>, vector<1x512xf32>
    %2 = vector.broadcast %1 : vector<1x512xf32> to vector<2x512xf32>
    %3 = arith.addf %0, %2 : vector<2x512xf32>
    %c0_3 = arith.constant 0 : index
    %c0_4 = arith.constant 0 : index
    %4 = vector.load %arg4[%c0_3, %c0_4] : memref<2x512xf32, #tpu.memory_space<vmem>>, vector<2x512xf32>
    tpu.vector_store %arg4[%c0_3, %c0_4], %3 {strides = array<i32>} : memref<2x512xf32, #tpu.memory_space<vmem>>, vector<2x512xf32>,
    return
  }
  func.func @transform_0(%arg0: i32, %arg1: i32) -> (i32, i32) {
    %c0_i32 = arith.constant 0 : i32
    return %arg1, %arg0 : i32, i32
  }
  func.func @transform_1(%arg0: i32, %arg1: i32) -> (i32, i32) {
    %c0_i32 = arith.constant 0 : i32
    %c0_i32_0 = arith.constant 0 : i32
    return %c0_i32, %arg0 : i32, i32
  }
  func.func @transform_2(%arg0: i32, %arg1: i32) -> (i32, i32) {
    %c0_i32 = arith.constant 0 : i32
    return %arg1, %arg0 : i32, i32
  }
}

</mosaic_0001>

<bundles_post_ra>
// kernel: tpu_custom_call.1
= control target key start
LH: loop header
LB: loop body
LE: loop exit
PB: predicated region body
PF: predicated region fallthrough
CT: control target
= control target key end

     0   :  { %7 = vsyncpa [#allocation3], 0  ;;  %s222_s0 = inlined_call_operand.hbm [shape: f32[2,512], index: 0, kind: input, shape index: {}]   ;;  %s223_s1 = inlined_call_operand.hbm [shape: f32[1,512], index: 1, kind: input, shape index: {}]   ;;  %s224_s2 = inlined_call_operand.hbm [shape: f32[2,512], index: 2, kind: output, shape index: {}]  }
   0x1   :  { %8 = vsyncpa [#allocation6], 0 }
   0x2   :  { %9 = vsyncpa [#allocation4], 0  ;;  %s167_s9 = smov [#allocation2]   ;;  %s168_s11 = smov [#allocation5]  }
   0x3   :  { %s16_s10 = sshll.u32 %s167_s9, 4  ;;  %s26_s12 = sshll.u32 %s168_s11, 4  ;;  %s17_s10 = int_to_ptr.vmem [resolvable:$true] %s16_s10  ;;  %s27_s12 = int_to_ptr.vmem [resolvable:$true] %s26_s12 }
   0x4   :  { %s95_s15 = scalar_lea.hbm %s222_s0, 128 }
   0x5   :  { %p96_p0 = scmp.ne.s32.totalorder %s222_s0, %s95_s15  ;;  %p99_p1 = scmp.lt.u32.totalorder %s95_s15, %s222_s0 }
   0x7   :  { %p101_p2 = pnand %p99_p1, %p96_p0 }
   0x9   :  { %104 = shalt.err (!%p101_p2)
}
   0xa   :  { %s105_s20 = scalar_lea.vmem %s17_s10, 128  ;;  %p110_p4 = scmp.lt.s32.totalorder %s17_s10, %s17_s10 }
   0xb   :  { %p106_p3 = scmp.ne.s32.totalorder %s17_s10, %s105_s20  ;;  %p111_p5 = scmp.lt.s32.totalorder %s105_s20, %s105_s20 }
   0xd   :  { %p112_p6 = por %p111_p5, %p110_p4 }
   0xf   :  { %p113_p7 = pnand %p112_p6, %p106_p3 }
  0x11   :  { %116 = shalt.err (!%p113_p7)
}
  0x12   :  { %19 = dma.hbm_to_vmem [thread:$0]  %s222_s0, 128, %s17_s10, [#allocation3]  }
  0x13   :  { %s117_s25 = scalar_lea.hbm %s223_s1, 64 }
  0x14   :  { %p118_p8 = scmp.ne.s32.totalorder %s223_s1, %s117_s25  ;;  %p121_p9 = scmp.lt.u32.totalorder %s117_s25, %s223_s1 }
  0x16   :  { %p123_p10 = pnand %p121_p9, %p118_p8 }
  0x18   :  { %126 = shalt.err (!%p123_p10)
}
  0x19   :  { %s127_s30 = scalar_lea.vmem %s27_s12, 64  ;;  %p132_p12 = scmp.lt.s32.totalorder %s27_s12, %s27_s12 }
  0x1a   :  { %p128_p11 = scmp.ne.s32.totalorder %s27_s12, %s127_s30  ;;  %p133_p13 = scmp.lt.s32.totalorder %s127_s30, %s127_s30 }
  0x1c   :  { %p134_p0 = por %p133_p13, %p132_p12 }
  0x1e   :  { %p135_p1 = pnand %p134_p0, %p128_p11 }
  0x20   :  { %138 = shalt.err (!%p135_p1)
}
  0x21   :  { %29 = dma.hbm_to_vmem [thread:$0]  %s223_s1, 64, %s27_s12, [#allocation6]  }
  0x22   :  { %161 = dma.done.wait [#allocation3], 128  }
  0x23   :  { %162 = vsyncadd [#allocation3], 4294967168 }
  0x24   :  { %163 = dma.done.wait [#allocation6], 64  }
  0x25   :  { %164 = vsyncadd [#allocation6], 4294967232  ;;  %v39_v0 = vlaneseq  ;;  %v169_v1 = vmov 1983009808   ;;  %v37_v9 = vld [vmem:[#allocation5] sm:$0xf] }
  0x26   :  { %v58_v2 = vunpack.c.l.s4 %v169_v1  ;;  %v36_v19 = vld [vmem:[#allocation2] sm:$0xff]  ;;  %s170_s1 = smov [#allocation7]  }
  0x27   :  { %v40_v3 = vshrl.u32 %v39_v0, 7  ;;  %s81_s4 = sshll.u32 %s170_s1, 4  ;;  %s82_s4 = int_to_ptr.vmem [resolvable:$true] %s81_s4 }
  0x28   :  { %v59_v4 = vunpack.c.0.s8 %v58_v2  ;;  %s139_s5 = scalar_lea.vmem %s82_s4, 128  ;;  %p144_p3 = scmp.lt.s32.totalorder %s82_s4, %s82_s4 }
  0x29   :  { %v41_v5 = vsub.s32 0, %v40_v3  ;;  %v45_v6 = vsub.s32 1, %v40_v3  ;;  %v49_v7 = vsub.s32 2, %v40_v3  ;;  %v53_v8 = vsub.s32 3, %v40_v3  ;;  %p140_p2 = scmp.ne.s32.totalorder %s82_s4, %s139_s5  ;;  %p145_p4 = scmp.lt.s32.totalorder %s139_s5, %s139_s5 }
  0x2a   :  { %v62_v10 = vsub.s32 %v59_v4, %v40_v3 }
  0x2b   :  { %v42_v11 = vrot.slane %v37_v9, %v41_v5  ;;  %v46_v12 = vrot.slane %v37_v9, %v45_v6  ;;  %v50_v13 = vrot.slane %v37_v9, %v49_v7  ;;  %v54_v14 = vrot.slane %v37_v9, %v53_v8  ;;  %p146_p5 = por %p145_p4, %p144_p3 }
  0x2d   :  { %v55_v15 = vcombine.low %v42_v11, %v46_v12  ;;  %v56_v16 = vcombine.low %v50_v13, %v54_v14  ;;  %p147_p6 = pnand %p146_p5, %p140_p2 }
  0x2f   :  { %v63_v17 = vrot.slane %v55_v15, %v62_v10  ;;  %v70_v18 = vrot.slane %v56_v16, %v62_v10 }
  0x31   :  { %v71_v20 = vcombine.low %v63_v17, %v70_v18 }
  0x33   :  { %v73_v21 = vadd.f32 %v71_v20, %v36_v19 }
  0x35   :  { %74 = vst [vmem:[#allocation7] sm:$0xff] %v73_v21 }
  0x36   :  { %150 = shalt.err (!%p147_p6)
}
  0x37   :  { %s151_s8 = scalar_lea.hbm %s224_s2, 128 }
  0x38   :  { %p152_p7 = scmp.ne.s32.totalorder %s224_s2, %s151_s8  ;;  %p155_p8 = scmp.lt.u32.totalorder %s151_s8, %s224_s2 }
  0x3a   :  { %p157_p9 = pnand %p155_p8, %p152_p7 }
  0x3c   :  { %160 = shalt.err (!%p157_p9)
}
  0x3d   :  { %84 = dma.vmem_to_hbm [thread:$0]  %s82_s4, 128, %s224_s2, [#allocation4]  }
  0x3e   :  { %165 = dma.done.wait [#allocation4], 128  }
  0x3f   :  { %166 = vsyncadd [#allocation4], 4294967168 }
  0x40   :  { %88 = vsyncpa [#allocation3], 1 }
  0x41   :  { %89 = vsyncpa [#allocation6], 1 }
  0x42   :  { %90 = vsyncpa [#allocation4], 1 }

</bundles_post_ra>
